<compile_context>
chip_gen: v6e
topology: v6e:2x2x1
jax: 0.10.0
libtpu: 0.0.40
codegen_flags: <defaults>
</compile_context>

<pallas_src>
from functools import partial

import jax
import jax.numpy as jnp
from jax.experimental import pallas as pl
from jax.experimental.pallas import tpu as pltpu


def _round_up(x, m):
    return (x + m - 1) // m * m


def _patch_embed_kernel(p_ref, w_ref, b_ref, o_ref):
    # p_ref: (TN, K)   token tile of patches (compute dtype)
    # w_ref: (K, Dp)   projection matrix, resident in VMEM across the whole grid
    # b_ref: (1, Dp)   bias (f32), resident
    # o_ref: (TN, Dp)  output token tile
    acc = jnp.dot(p_ref[...], w_ref[...], preferred_element_type=jnp.float32)  # MXU, f32 acc
    o_ref[...] = (acc + b_ref[...]).astype(o_ref.dtype)


def prepare_patch_embed_params(weight, bias, *, data_format="NCHW",
                               compute_dtype=jnp.bfloat16):
    """One-time (init-time) conversion of the Conv2d parameters.

    weight: (D, C, p, p) Conv2d weight; bias: (D,).
    Returns (w_mat, b_mat):
      w_mat: (K, Dp) in `compute_dtype`, K ordered (c,kh,kw) for NCHW or (kh,kw,c) for NHWC,
             with D zero-padded to a multiple of 128 (lane-dense output stores).
      b_mat: (1, Dp) float32 bias (added in f32 before the final cast).
    """
    assert data_format in ("NCHW", "NHWC")
    D, C, ph, pw = weight.shape
    if data_format == "NCHW":
        w_mat = weight.reshape(D, C * ph * pw).T            # K order (c, kh, kw)
    else:
        w_mat = jnp.transpose(weight, (2, 3, 1, 0)).reshape(ph * pw * C, D)  # (kh, kw, c)
    Dp = _round_up(D, 128)
    w_mat = w_mat.astype(compute_dtype)
    b_mat = bias.astype(jnp.float32).reshape(1, D)
    if Dp != D:
        w_mat = jnp.pad(w_mat, ((0, 0), (0, Dp - D)))
        b_mat = jnp.pad(b_mat, ((0, 0), (0, Dp - D)))
    return w_mat, b_mat


@partial(jax.jit,
         static_argnames=("patch_size", "embed_dim", "data_format", "tn", "out_dtype"))
def patch_embed_for_tran(x, w_mat, b_mat, *, patch_size, embed_dim,
                         data_format="NCHW", tn=512, out_dtype=None):
    """Forward of PatchEmbed_for_Tran.

    x: (B, C, H, W) if data_format == "NCHW" (PyTorch layout), else (B, H, W, C).
    w_mat, b_mat: from prepare_patch_embed_params (same data_format).
    Returns (B, N, embed_dim) with N = (H/p)*(W/p), == conv(x).flatten(2).transpose(1, 2).
    """
    assert data_format in ("NCHW", "NHWC")
    p = patch_size
    if data_format == "NCHW":
        B, C, H, W = x.shape
    else:
        B, H, W, C = x.shape
    assert H % p == 0 and W % p == 0, "padding=0: spatial dims must divide patch size"
    Hp, Wp = H // p, W // p
    N = Hp * Wp
    BN = B * N
    K = C * p * p
    Kw, Dp = w_mat.shape
    assert Kw == K, "weight does not match in_chans / patch_size / data_format"
    assert Dp >= embed_dim and Dp % 128 == 0

    out_dtype = x.dtype if out_dtype is None else out_dtype
    compute_dtype = w_mat.dtype

    # --- Single-pass patch extraction (one transpose copy; cast fuses into it). ---
    if data_format == "NCHW":
        # K order (c, kh, kw): contiguous inner runs of length p from NCHW.
        patches = x.reshape(B, C, Hp, p, Wp, p).transpose(0, 2, 4, 1, 3, 5)
    else:
        # K order (kh, kw, c): contiguous inner runs of length p*C from NHWC.
        patches = x.reshape(B, Hp, p, Wp, p, C).transpose(0, 1, 3, 2, 4, 5)
    patches = patches.reshape(BN, K).astype(compute_dtype)

    # --- Token tile: multiple of 16 (bf16 sublane packing) / 8, >=2 grid steps when possible. ---
    sub = 16 if compute_dtype == jnp.bfloat16 else 8
    TN = min(tn, _round_up(pl.cdiv(BN, 2), sub))
    TN = max(sub, _round_up(TN, sub))
    grid = (pl.cdiv(BN, TN),)   # ragged last block: OOB output rows are simply not written back

    itemsize_in = jnp.dtype(compute_dtype).itemsize
    itemsize_out = jnp.dtype(out_dtype).itemsize

    # VMEM budget: double-buffered input/output tiles + resident weight/bias (+ slack).
    vmem_bytes = (2 * TN * K * itemsize_in
                  + 2 * TN * Dp * itemsize_out
                  + 2 * (K * Dp * itemsize_in + Dp * 4))
    vmem_limit = int(min(max(2 * vmem_bytes, 16 << 20), 112 << 20))

    cost = pl.CostEstimate(
        flops=2 * BN * K * Dp,
        transcendentals=0,
        bytes_accessed=(BN * K * itemsize_in          # patches read
                        + K * Dp * itemsize_in        # weight read (once)
                        + Dp * 4                      # bias read
                        + BN * Dp * itemsize_out),    # output write
    )

    out = pl.pallas_call(
        _patch_embed_kernel,
        out_shape=jax.ShapeDtypeStruct((BN, Dp), out_dtype),
        grid=grid,
        in_specs=[
            pl.BlockSpec((TN, K), lambda t: (t, 0)),    # token tile of patches
            pl.BlockSpec((K, Dp), lambda t: (0, 0)),    # weight: resident (constant block idx)
            pl.BlockSpec((1, Dp), lambda t: (0, 0)),    # bias: resident
        ],
        out_specs=pl.BlockSpec((TN, Dp), lambda t: (t, 0)),
        compiler_params=pltpu.CompilerParams(
            dimension_semantics=("parallel",),          # shardable across v7x's 2 TensorCores
            vmem_limit_bytes=vmem_limit,
        ),
        cost_estimate=cost,
    )(patches, w_mat, b_mat)

    if Dp != embed_dim:
        out = out[:, :embed_dim]
    return out.reshape(B, N, embed_dim)


def _reference(x_nchw, weight, bias, patch_size):
    # Pure-JAX reference using a real conv, mirroring the PyTorch forward.
    out = jax.lax.conv_general_dilated(
        x_nchw, weight,
        window_strides=(patch_size, patch_size),
        padding="VALID",
        dimension_numbers=("NCHW", "OIHW", "NCHW"),
    ) + bias.reshape(1, -1, 1, 1)
    B, C, H, W = out.shape
    return out.reshape(B, C, H * W).transpose(0, 2, 1)


if __name__ == "__main__":
    # Small shapes: batch=2, in_chans=4, spatial=16, patch_size=4, embed_dim=32
    B, C, H, W = 2, 4, 16, 16
    patch_size = 4
    embed_dim = 32

    key = jax.random.PRNGKey(0)
    kx, kw, kb, kx3 = jax.random.split(key, 4)
    x = jax.random.normal(kx, (B, C, H, W), dtype=jnp.float32)
    weight = jax.random.normal(kw, (embed_dim, C, patch_size, patch_size),
                               dtype=jnp.float32) * 0.02
    bias = jax.random.normal(kb, (embed_dim,), dtype=jnp.float32) * 0.02

    ref = _reference(x, weight, bias, patch_size)
    N = (H // patch_size) * (W // patch_size)

    # 1) f32 MXU path, NCHW input (exact match against the conv reference).
    w_f32, b_f32 = prepare_patch_embed_params(weight, bias, data_format="NCHW",
                                              compute_dtype=jnp.float32)
    out = patch_embed_for_tran(x, w_f32, b_f32, patch_size=patch_size, embed_dim=embed_dim)
    out = jax.block_until_ready(out)
    assert out.shape == (B, N, embed_dim)
    assert jnp.allclose(out, ref, atol=1e-4, rtol=1e-4)

    # 2) Default bf16 MXU path, NCHW input (f32 accumulate; small input-quantization error).
    w_bf16, b_bf16 = prepare_patch_embed_params(weight, bias, data_format="NCHW")
    out_bf = patch_embed_for_tran(x, w_bf16, b_bf16, patch_size=patch_size, embed_dim=embed_dim)
    out_bf = jax.block_until_ready(out_bf)
    assert out_bf.shape == (B, N, embed_dim)
    assert jnp.allclose(out_bf, ref, atol=3e-2, rtol=3e-2)

    # 3) NHWC fast path with bf16 operands AND bf16 output (halved writeback bytes).
    x_nhwc = jnp.transpose(x, (0, 2, 3, 1))
    w_nhwc, b_nhwc = prepare_patch_embed_params(weight, bias, data_format="NHWC")
    out_nhwc = patch_embed_for_tran(x_nhwc, w_nhwc, b_nhwc, patch_size=patch_size,
                                    embed_dim=embed_dim, data_format="NHWC",
                                    out_dtype=jnp.bfloat16)
    out_nhwc = jax.block_until_ready(out_nhwc)
    assert out_nhwc.shape == (B, N, embed_dim) and out_nhwc.dtype == jnp.bfloat16
    assert jnp.allclose(out_nhwc.astype(jnp.float32), ref, atol=5e-2, rtol=5e-2)

    # 4) Ragged token-grid path (B*N not a multiple of the token tile) with B=3.
    x3 = jax.random.normal(kx3, (3, C, H, W), dtype=jnp.float32)
    ref3 = _reference(x3, weight, bias, patch_size)
    out3 = patch_embed_for_tran(x3, w_bf16, b_bf16, patch_size=patch_size, embed_dim=embed_dim)
    out3 = jax.block_until_ready(out3)
    assert out3.shape == (3, N, embed_dim)
    assert jnp.allclose(out3, ref3, atol=3e-2, rtol=3e-2)

    print("KERNEL_OK")
</pallas_src>

<mosaic_0001>
module attributes {stable_mosaic.version = 11 : i64} {
  func.func @_patch_embed_kernel(%arg0: i32, %arg1: memref<16x64xf32, #tpu.memory_space<vmem>>, %arg2: memref<64x128xf32, #tpu.memory_space<vmem>>, %arg3: memref<1x128xf32, #tpu.memory_space<vmem>>, %arg4: memref<16x128xf32, #tpu.memory_space<vmem>>) attributes {dimension_semantics = [#tpu.dimension_semantics<parallel>], iteration_bounds = array<i64: 2>, scalar_prefetch = 0 : i64, scratch_operands = 0 : i64, tpu.core_type = #tpu.core_type<tc>, window_params = [{transform_indices = @transform_0, window_bounds = array<i64: 16, 64>}, {pipeline_mode = #tpu.pipeline_mode<synchronous>, transform_indices = @transform_1, window_bounds = array<i64: 64, 128>}, {pipeline_mode = #tpu.pipeline_mode<synchronous>, transform_indices = @transform_2, window_bounds = array<i64: 1, 128>}, {transform_indices = @transform_3, window_bounds = array<i64: 16, 128>}]} {
    %c0 = arith.constant 0 : index
    %c0_0 = arith.constant 0 : index
    %0 = vector.load %arg1[%c0, %c0_0] : memref<16x64xf32, #tpu.memory_space<vmem>>, vector<16x64xf32>
    %c0_1 = arith.constant 0 : index
    %c0_2 = arith.constant 0 : index
    %1 = vector.load %arg2[%c0_1, %c0_2] : memref<64x128xf32, #tpu.memory_space<vmem>>, vector<64x128xf32>
    %cst = arith.constant dense<0.000000e+00> : vector<16x128xf32>
    %2 = tpu.matmul %0, %1, %cst {dimension_numbers = #tpu.dot_dimension_numbers<[1], [0], [0], [1], [0, 0, 1, 1], [], []>} : vector<16x64xf32>, vector<64x128xf32>, vector<16x128xf32> -> vector<16x128xf32>
    %c0_3 = arith.constant 0 : index
    %c0_4 = arith.constant 0 : index
    %3 = vector.load %arg3[%c0_3, %c0_4] : memref<1x128xf32, #tpu.memory_space<vmem>>, vector<1x128xf32>
    %4 = vector.broadcast %3 : vector<1x128xf32> to vector<16x128xf32>
    %5 = arith.addf %2, %4 : vector<16x128xf32>
    %c0_5 = arith.constant 0 : index
    %c0_6 = arith.constant 0 : index
    %6 = vector.load %arg4[%c0_5, %c0_6] : memref<16x128xf32, #tpu.memory_space<vmem>>, vector<16x128xf32>
    tpu.vector_store %arg4[%c0_5, %c0_6], %5 {strides = array<i32>} : memref<16x128xf32, #tpu.memory_space<vmem>>, vector<16x128xf32>,
    return
  }
  func.func @transform_0(%arg0: i32) -> (i32, i32) {
    %c0_i32 = arith.constant 0 : i32
    %c0_i32_0 = arith.constant 0 : i32
    return %arg0, %c0_i32 : i32, i32
  }
  func.func @transform_1(%arg0: i32) -> (i32, i32) {
    %c0_i32 = arith.constant 0 : i32
    %c0_i32_0 = arith.constant 0 : i32
    %c0_i32_1 = arith.constant 0 : i32
    return %c0_i32, %c0_i32_0 : i32, i32
  }
  func.func @transform_2(%arg0: i32) -> (i32, i32) {
    %c0_i32 = arith.constant 0 : i32
    %c0_i32_0 = arith.constant 0 : i32
    %c0_i32_1 = arith.constant 0 : i32
    return %c0_i32, %c0_i32_0 : i32, i32
  }
  func.func @transform_3(%arg0: i32) -> (i32, i32) {
    %c0_i32 = arith.constant 0 : i32
    %c0_i32_0 = arith.constant 0 : i32
    return %arg0, %c0_i32 : i32, i32
  }
}

</mosaic_0001>

<bundles_post_ra>
// kernel: patch_embed_for_tran.1
= control target key start
LH: loop header
LB: loop body
LE: loop exit
PB: predicated region body
PF: predicated region fallthrough
CT: control target
= control target key end

     0   :  { %8 = vsyncpa [#allocation3], 0  ;;  %s650_s0 = inlined_call_operand.vmem [shape: f32[32,64], index: 0, kind: input, shape index: {}]   ;;  %s651_s1 = inlined_call_operand.vmem [shape: f32[64,128], index: 1, kind: input, shape index: {}]   ;;  %s652_s2 = inlined_call_operand.vmem [shape: f32[1,128], index: 2, kind: input, shape index: {}]   ;;  %s653_s3 = inlined_call_operand.hbm [shape: f32[32,128], index: 3, kind: output, shape index: {}]  }
   0x1   :  { %10 = vsyncpa [#allocation3 + $0x1], 0  ;;  %s520_s12 = smov 0   ;;  %s522_s13 = smov 0  }
   0x2   :  { %s524_s14 = smov 0   ;;  %s526_s15 = smov 0  }
   0x3 LB: > { %s541_s16 = sadd.s32 4294967295, %s495_s15   ;;  %s349_s17 = sadd.s32 4294967294, %s495_s15   ;;  %s495_s15 = sphi %s526_s15, %s659_s15   ;;  %s491_s14 = sphi %s524_s14, %s658_s14   ;;  %s487_s13 = sphi %s522_s13, %s657_s13   ;;  %s483_s12 = sphi %s520_s12, %s656_s12  }
   0x4   : > { %s545_s18 = sadd.s32 1, %s495_s15   ;;  %s91_s19 = sadd.s32 1, %s491_s14 }
   0x5   : > { %s88_s20 = ssub.s32 %s495_s15, %s545_s18  ;;  %p101_p0 = scmp.ne.s32.totalorder %s491_s14, %s487_s13 }
   0x6   : > { %p89_p1 = scmp.eq.s32.totalorder %s88_s20, 0  ;;  %p102_p2 = scmp.eq.s32.totalorder %s541_s16, 1 }
   0x7   : > { %p107_p3 = scmp.ne.s32.totalorder %s487_s13, %s483_s12  ;;  %p108_p4 = scmp.eq.s32.totalorder %s349_s17, 1 }
   0x8   : > { %s556_s21 = scalar_select %p89_p1, %s491_s14, %s91_s19  }
   0x9   : > { %p558_p5 = por %p102_p2, %p101_p0  ;;  %p562_p6 = por %p108_p4, %p107_p3 }
   0xa   : > { %p352_p7 = scmp.ge.s32.totalorder %s495_s15, 1  ;;  %p141_p8 = scmp.lt.s32.totalorder %s495_s15, 3 }
   0xc   : > { %p142_p9 = pnand %p352_p7, %p141_p8 }
   0xd   : > { %s354_s28 = sshll.u32 (!%p142_p9), %s541_s16, 1  ;;  %s162_s27 = sand.u32 (!%p142_p9), 1, %s487_s13  }
   0xe   : > { %145 = sbr.rel (%p142_p9) target bundleno = 247 (0xf7), region = 32  ;;  %p166_p10 = scmp.lt.s32.totalorder (!%p142_p9), %s354_s28, 3 }
   0xf   : > { %s610_s10 = scalar_lea.sflag (!%p142_p9), [#allocation3], %s162_s27 }
  0x13   : > { %v181_v0 = vld [vmem:[%s651_s1 + $0x38] sm:$0xff]  ;;  %v180_v1 = vld [vmem:[%s651_s1 + $0x30] sm:$0xff]  ;;  %v179_v2 = vld [vmem:[%s651_s1 + $0x28] sm:$0xff]  ;;  %s661_s28 = smov (!%p166_p10, %s354_s28), 3  ;;  %vm189_vm0 = vcmask 523264  }
  0x14   : > { %375 = vmatprep.subr.mxu0 %v181_v0  ;;  %v178_v3 = vld [vmem:[%s651_s1 + $0x20] sm:$0xff]  ;;  %s355_s6 = sshll.u32 %s661_s28, 3  ;;  %v177_v4 = vld [vmem:[%s651_s1 + $0x18] sm:$0xff]  ;;  %v176_v6 = vld [vmem:[%s651_s1 + $0x10] sm:$0xff]  ;;  %s353_s28 = sshll.u32 %s162_s27, 4 }
  0x15   : > { %376 = vmatpush3.msra.mxu0 %v181_v0  ;;  %s169_s11 = scalar_lea.vmem %s650_s0, %s355_s6  ;;  %v175_v7 = vld [vmem:[%s651_s1 + $0x8] sm:$0xff]  ;;  %v174_v8 = vld [vmem:[%s651_s1] sm:$0xff]  ;;  %s164_s4 = scalar_lea.vmem [#allocation2], %s353_s28 }
  0x16   : > { %377 = vmatprep.subr.mxu0 %v180_v1  ;;  %v172_v5 = vld [vmem:[%s169_s11] sm:$0xff]  ;;  %v173_v9 = vld [vmem:[%s169_s11 + $0x8] sm:$0xff]  ;;  %s287_s5 = sshll.u32 %s164_s4, 4  ;;  %s364_s6 = sshll.u32 %s541_s16, 8  ;;  %s603_s5 = int_to_ptr.vmem [resolvable:$true] %s287_s5 }
  0x17   : > { %378 = vmatpush3.msra.mxu0 %v180_v1  ;;  %391 = vmatprep.mubr.msk.f32.mxu0 %vm189_vm0, %v172_v5  ;;  %v356_v10 = vld [vmem:[%s652_s2] ss:$0 sm:$0xff]  ;;  %s608_s9 = scalar_lea.hbm %s653_s3, %s364_s6  ;;  %s435_s11 = scalar_lea.vmem %s603_s5, 256 }
  0x18   : > { %379 = vmatprep.subr.mxu0 %v179_v2  ;;  %p436_p11 = scmp.ne.s32.totalorder %s603_s5, %s435_s11  ;;  %s497_s16 = smov [#allocation2]  }
  0x19   : > { %380 = vmatpush3.msra.mxu0 %v179_v2  ;;  %s439_s17 = sshll.u32 %s497_s16, 4  ;;  %s440_s17 = int_to_ptr.vmem [resolvable:$false] %s439_s17 }
  0x1a   : > { %381 = vmatprep.subr.mxu0 %v178_v3  ;;  %p437_p12 = pnand %p436_p11, %p558_p5  ;;  %s441_s19 = scalar_lea.vmem %s440_s17, 512 }
  0x1b   : > { %382 = vmatpush3.msra.mxu0 %v178_v3  ;;  %p442_p0 = scmp.lt.s32.totalorder %s603_s5, %s440_s17  ;;  %p443_p1 = scmp.lt.s32.totalorder %s441_s19, %s435_s11 }
  0x1c   : > { %383 = vmatprep.subr.mxu0 %v177_v4  ;;  %p438_p13 = pneg %p437_p12 }
  0x1d   : > { %384 = vmatpush3.msra.mxu0 %v177_v4  ;;  %p444_p2 = por %p443_p1, %p442_p0 }
  0x1e   : > { %385 = vmatprep.subr.mxu0 %v176_v6 }
  0x1f   : > { %386 = vmatpush3.msra.mxu0 %v176_v6  ;;  %p445_p3 = pnand %p444_p2, %p438_p13 }
  0x20   : > { %387 = vmatprep.subr.mxu0 %v175_v7 }
  0x21   : > { %388 = vmatpush3.msra.mxu0 %v175_v7 }
  0x22   : > { %389 = vmatprep.subr.mxu0 %v174_v8 }
  0x23   : > { %390 = vmatpush3.msra.mxu0 %v174_v8 }
  0x24   : > { %392 = vmatmul.mubr.msk.f32.vlgmr.msra.gmra.mxu0 %vm189_vm0, %v173_v9 }
  0xe4   : > { %v393_v11 = vpop.f32.mrf.mxu0 }
  0xe5   : > { %v268_v12 = vadd.f32 %v393_v11, %v356_v10 }
  0xe6   : > { %v262_v13 = vpop.f32.mrf.mxu0 }
  0xe7   : > { %272 = vst [vmem:[%s164_s4 + $0x8] sm:$0xff] %v268_v12  ;;  %v263_v14 = vadd.f32 %v356_v10, %v262_v13 }
  0xe9   : > { %271 = vst [vmem:[%s164_s4] sm:$0xff] %v263_v14 }
  0xea   : > { %448 = shalt.err (!%p445_p3)
}
  0xeb   : > { %s449_s20 = scalar_lea.hbm %s608_s9, 256  ;;  %s453_s26 = scalar_lea.hbm %s653_s3, 512 }
  0xec   : > { %p450_p4 = scmp.ne.s32.totalorder %s608_s9, %s449_s20  ;;  %p454_p9 = scmp.lt.s32.totalorder %s608_s9, %s653_s3 }
  0xed   : > { %p455_p10 = scmp.lt.s32.totalorder %s453_s26, %s449_s20 }
  0xee   : > { %p451_p7 = pnand %p450_p4, %p558_p5 }
  0xef   : > { %p456_p11 = por %p455_p10, %p454_p9 }
  0xf0   : > { %p452_p8 = pneg %p451_p7 }
  0xf2   : > { %p457_p12 = pnand %p456_p11, %p452_p8 }
  0xf4   : > { %460 = shalt.err (!%p457_p12)
}
  0xf5   : > { %s498_s29 = smov 128   ;;  %s499_s30 = smov 8  }
  0xf6   : > { %394 = dma.vmem_to_hbm [thread:$0]  (%p558_p5), %s603_s5, 256, %s608_s9, %s610_s10, %s498_s29, %s498_s29, %s499_s30  }
  0xf7 PF: > { %p400_p13 = scmp.ge.s32.totalorder %s495_s15, 2  ;;  %s302_s4 = sand.u32 1, %s483_s12  }
  0xf8   : > { %s303_s6 = scalar_lea.sflag [#allocation3], %s302_s4 }
  0xf9   : > { %p397_p0 = pnand %p400_p13, %p562_p6 }
  0xfb   : > { %p398_p1 = pneg %p397_p0 }
  0xfd   : > { %478 = dma.done.wait (%p398_p1), %s303_s6, 256  }
  0xfe   : > { %480 = vsyncadd (%p398_p1), %s303_s6, 4294967040  ;;  %p13_p2 = scmp.ge.s32.totalorder %s545_s18, 4   ;;  %s656_s12 = smov %s487_s13 }
  0xff   : > { %s657_s13 = smov %s491_s14  ;;  %s658_s14 = smov %s556_s21 }
 0x100   : > { %s659_s15 = smov %s545_s18  ;;  %15 = sbr.rel (!%p13_p2) target bundleno = 3 (0x3), region = 67 }
 0x105   :  { %308 = vsyncpa [#allocation3], 1 }
 0x106   :  { %310 = vsyncpa [#allocation3 + $0x1], 1 }

</bundles_post_ra>
